<compile_context>
chip_gen: v6e
topology: v6e:2x2x1
jax: 0.10.0
libtpu: 0.0.40
codegen_flags: <defaults>
</compile_context>

<pallas_src>
import jax
import jax.numpy as jnp
from jax import lax
from jax.experimental import pallas as pl
from jax.experimental.pallas import tpu as pltpu


def _make_jaccard_kernel(hw, tile_n, ragged):
    """Builds the per-tile partial-sum kernel.

    Block views:
      logits_ref: (1, C, TN)  raw logits (any float dtype; upcast in-kernel)
      labels_ref: (1, 1, TN)  int32 class indices
      out_ref:    (1, C, 2)   per-batch [intersection, cardinality]
      inter_acc / card_acc: (C, 1) f32 VMEM scratch accumulators
    """

    def kernel(logits_ref, labels_ref, out_ref, inter_acc, card_acc):
        j = pl.program_id(1)

        @pl.when(j == 0)
        def _():
            inter_acc[...] = jnp.zeros_like(inter_acc)
            card_acc[...] = jnp.zeros_like(card_acc)

        raw = logits_ref[...][0].astype(jnp.float32)      # (C, TN)
        labels = labels_ref[...][0]                       # (1, TN)
        C, TN = raw.shape

        if ragged:
            lane = lax.broadcasted_iota(jnp.int32, (1, TN), 1)
            lane_valid = (j * tile_n + lane) < hw         # (1, TN) bool
            # zero invalid lanes BEFORE exp so OOB garbage can't become inf/NaN
            raw = jnp.where(lane_valid, raw, 0.0)

        # softmax over the class (sublane) axis == torch F.softmax(logits, dim=1)
        m = jnp.max(raw, axis=0, keepdims=True)
        e = jnp.exp(raw - m)
        denom = jnp.sum(e, axis=0, keepdims=True)
        # reciprocal keeps the divide off the VALU path; approx=True is even
        # cheaper (EUP) but slightly perturbs the probabilities.
        probas = e * pl.reciprocal(denom, approx=False)   # (C, TN)

        class_ids = lax.broadcasted_iota(jnp.int32, (C, TN), 0)
        onehot = labels == class_ids                      # (C, TN) bool
        if ragged:
            onehot = onehot & lane_valid
        onehot = onehot.astype(jnp.float32)

        inter = jnp.sum(probas * onehot, axis=1, keepdims=True)        # (C, 1)
        if ragged:
            psum = jnp.sum(probas * lane_valid.astype(jnp.float32),
                           axis=1, keepdims=True)
        else:
            psum = jnp.sum(probas, axis=1, keepdims=True)
        card = psum + jnp.sum(onehot, axis=1, keepdims=True)           # (C, 1)

        inter_acc[...] += inter
        card_acc[...] += card

        # single writeback per batch slice (output block is resident across j)
        @pl.when(j == pl.num_programs(1) - 1)
        def _():
            out_ref[...] = jnp.concatenate(
                [inter_acc[...], card_acc[...]], axis=1)[None]

    return kernel


def jaccard_loss(logits, true, eps=1e-07, tile_n=2048):
    """Matches JaccardLoss.forward for true of shape [B, 1, H, W] (or [B, H, W],
    treated with full spatial reduction dims=(0,2,3))."""
    # TODO(synk): the torch code uses dims=(0,2) when `true` is 3-D (a quirk of
    # `true.ndimension()`); here both 3-D and 4-D `true` reduce over (0, 2, 3).
    B, C, H, W = logits.shape
    if true.ndim == 4:
        true = true[:, 0]                                  # == true.squeeze(1)
    HW = H * W

    # natural (B, C, H*W) layout: free reshapes — no HBM transpose / pad / cast
    logits3d = logits.reshape(B, C, HW)
    labels3d = true.reshape(B, 1, HW).astype(jnp.int32)

    # Tile sizing: big lane tiles (mem-bound kernel). Last block dim must be a
    # multiple of 128 (or the full extent for tiny images). Keep double-
    # buffered inputs comfortably under v5e's 16 MiB scoped-VMEM default.
    bytes_per_pix = C * logits3d.dtype.itemsize + 4        # logits + labels
    cap = max(128, (((8 * 1024 * 1024) // (2 * bytes_per_pix)) // 128) * 128)
    if HW <= 128:
        tile = HW                                          # full-extent block
    else:
        tile = min(tile_n, cap, (HW // 128) * 128)
    num_tiles = pl.cdiv(HW, tile)
    ragged = (HW % tile) != 0

    kernel = _make_jaccard_kernel(HW, tile, ragged)

    sums = pl.pallas_call(
        kernel,
        out_shape=jax.ShapeDtypeStruct((B, C, 2), jnp.float32),
        grid_spec=pltpu.PrefetchScalarGridSpec(
            num_scalar_prefetch=0,
            grid=(B, num_tiles),
            in_specs=[
                pl.BlockSpec((1, C, tile), lambda b, j: (b, 0, j)),
                pl.BlockSpec((1, 1, tile), lambda b, j: (b, 0, j)),
            ],
            out_specs=pl.BlockSpec((1, C, 2), lambda b, j: (b, 0, 0)),
            scratch_shapes=[pltpu.VMEM((C, 1), jnp.float32),
                            pltpu.VMEM((C, 1), jnp.float32)],
        ),
        compiler_params=pltpu.CompilerParams(
            # batch axis parallel -> megacore split on v7x; tile axis is the
            # reduction (output-resident accumulator) so it stays arbitrary.
            dimension_semantics=("parallel", "arbitrary")),
    )(logits3d, labels3d)

    intersection = jnp.sum(sums[:, :, 0], axis=0)          # (C,)
    cardinality = jnp.sum(sums[:, :, 1], axis=0)           # (C,)
    union = cardinality - intersection
    jacc = jnp.mean(intersection / (union + eps))
    return (1.0 - jacc).astype(jnp.float32)


if __name__ == "__main__":
    key = jax.random.PRNGKey(0)
    k1, k2 = jax.random.split(key)
    B, C, H, W = 2, 4, 16, 16
    logits = jax.random.normal(k1, (B, C, H, W), dtype=jnp.float32)
    true = jax.random.randint(k2, (B, 1, H, W), 0, C, dtype=jnp.int32)

    loss = jax.block_until_ready(jaccard_loss(logits, true))

    # pure-JAX reference (same math as the torch module for 4-D `true`)
    probas = jax.nn.softmax(logits, axis=1)
    onehot = jnp.transpose(jax.nn.one_hot(true[:, 0], C, dtype=jnp.float32),
                           (0, 3, 1, 2))
    inter = jnp.sum(probas * onehot, axis=(0, 2, 3))
    card = jnp.sum(probas + onehot, axis=(0, 2, 3))
    ref = 1.0 - jnp.mean(inter / (card - inter + 1e-07))

    assert jnp.allclose(loss, ref, atol=1e-5, rtol=1e-5), (loss, ref)

    # bf16 input path: bf16 is DMA'd and upcast inside the kernel.
    loss_bf16 = jax.block_until_ready(jaccard_loss(logits.astype(jnp.bfloat16), true))
    assert jnp.allclose(loss_bf16, ref, atol=5e-2), (loss_bf16, ref)

    print("KERNEL_OK")
</pallas_src>

<mosaic_0001>
module attributes {stable_mosaic.version = 11 : i64} {
  func.func @kernel(%arg0: i32, %arg1: i32, %arg2: memref<1x4x256xf32, #tpu.memory_space<vmem>>, %arg3: memref<1x1x256xi32, #tpu.memory_space<vmem>>, %arg4: memref<1x4x2xf32, #tpu.memory_space<vmem>>, %arg5: memref<4x1xf32, #tpu.memory_space<vmem>>, %arg6: memref<4x1xf32, #tpu.memory_space<vmem>>) attributes {dimension_semantics = [#tpu.dimension_semantics<parallel>, #tpu.dimension_semantics<arbitrary>], iteration_bounds = array<i64: 2, 1>, scalar_prefetch = 0 : i64, scratch_operands = 2 : i64, tpu.core_type = #tpu.core_type<tc>, window_params = [{transform_indices = @transform_0, window_bounds = array<i64: 1, 4, 256>}, {transform_indices = @transform_1, window_bounds = array<i64: 1, 1, 256>}, {transform_indices = @transform_2, window_bounds = array<i64: 1, 4, 2>}]} {
    %c0_i32 = arith.constant 0 : i32
    %0 = arith.cmpi eq, %arg1, %c0_i32 : i32
    %1 = arith.extui %0 : i1 to i32
    %c0_i32_0 = arith.constant 0 : i32
    %2 = arith.cmpi ne, %1, %c0_i32_0 : i32
    scf.if %2 {
      %cst_20 = arith.constant 0.000000e+00 : f32
      %39 = vector.broadcast %cst_20 : f32 to vector<4x1xf32>
      %c0_21 = arith.constant 0 : index
      %c0_22 = arith.constant 0 : index
      %40 = vector.load %arg5[%c0_21, %c0_22] : memref<4x1xf32, #tpu.memory_space<vmem>>, vector<4x1xf32>
      tpu.vector_store %arg5[%c0_21, %c0_22], %39 {strides = array<i32>} : memref<4x1xf32, #tpu.memory_space<vmem>>, vector<4x1xf32>,
      %cst_23 = arith.constant 0.000000e+00 : f32
      %41 = vector.broadcast %cst_23 : f32 to vector<4x1xf32>
      %c0_24 = arith.constant 0 : index
      %c0_25 = arith.constant 0 : index
      %42 = vector.load %arg6[%c0_24, %c0_25] : memref<4x1xf32, #tpu.memory_space<vmem>>, vector<4x1xf32>
      tpu.vector_store %arg6[%c0_24, %c0_25], %41 {strides = array<i32>} : memref<4x1xf32, #tpu.memory_space<vmem>>, vector<4x1xf32>,
    } else {
    }
    %c0 = arith.constant 0 : index
    %c0_1 = arith.constant 0 : index
    %c0_2 = arith.constant 0 : index
    %3 = vector.load %arg2[%c0, %c0_1, %c0_2] : memref<1x4x256xf32, #tpu.memory_space<vmem>>, vector<1x4x256xf32>
    %4 = vector.shape_cast %3 : vector<1x4x256xf32> to vector<4x256xf32>
    %c0_3 = arith.constant 0 : index
    %c0_4 = arith.constant 0 : index
    %c0_5 = arith.constant 0 : index
    %5 = vector.load %arg3[%c0_3, %c0_4, %c0_5] : memref<1x1x256xi32, #tpu.memory_space<vmem>>, vector<1x1x256xi32>
    %6 = vector.shape_cast %5 : vector<1x1x256xi32> to vector<1x256xi32>
    %cst = arith.constant dense<0xFF800000> : vector<256xf32>
    %7 = vector.multi_reduction <maximumf>, %4, %cst [0] : vector<4x256xf32> to vector<256xf32>
    %8 = vector.shape_cast %7 : vector<256xf32> to vector<1x256xf32>
    %9 = vector.broadcast %8 : vector<1x256xf32> to vector<4x256xf32>
    %10 = arith.subf %4, %9 : vector<4x256xf32>
    %11 = math.exp %10 : vector<4x256xf32>
    %cst_6 = arith.constant dense<0.000000e+00> : vector<256xf32>
    %12 = vector.multi_reduction <add>, %11, %cst_6 [0] : vector<4x256xf32> to vector<256xf32>
    %13 = vector.shape_cast %12 : vector<256xf32> to vector<1x256xf32>
    %14 = tpu.reciprocal %13 : vector<1x256xf32> -> vector<1x256xf32>
    %15 = vector.broadcast %14 : vector<1x256xf32> to vector<4x256xf32>
    %16 = arith.mulf %11, %15 : vector<4x256xf32>
    %17 = tpu.iota {dimensions = array<i32: 0>} : vector<4x256xi32>
    %18 = vector.broadcast %6 : vector<1x256xi32> to vector<4x256xi32>
    %19 = arith.cmpi eq, %18, %17 : vector<4x256xi32>
    %20 = arith.extui %19 : vector<4x256xi1> to vector<4x256xi32>
    %21 = arith.sitofp %20 : vector<4x256xi32> to vector<4x256xf32>
    %22 = arith.mulf %16, %21 : vector<4x256xf32>
    %cst_7 = arith.constant dense<0.000000e+00> : vector<4xf32>
    %23 = vector.multi_reduction <add>, %22, %cst_7 [1] : vector<4x256xf32> to vector<4xf32>
    %24 = vector.shape_cast %23 : vector<4xf32> to vector<4x1xf32>
    %cst_8 = arith.constant dense<0.000000e+00> : vector<4xf32>
    %25 = vector.multi_reduction <add>, %16, %cst_8 [1] : vector<4x256xf32> to vector<4xf32>
    %26 = vector.shape_cast %25 : vector<4xf32> to vector<4x1xf32>
    %cst_9 = arith.constant dense<0.000000e+00> : vector<4xf32>
    %27 = vector.multi_reduction <add>, %21, %cst_9 [1] : vector<4x256xf32> to vector<4xf32>
    %28 = vector.shape_cast %27 : vector<4xf32> to vector<4x1xf32>
    %29 = arith.addf %26, %28 : vector<4x1xf32>
    %c0_10 = arith.constant 0 : index
    %c0_11 = arith.constant 0 : index
    %30 = vector.load %arg5[%c0_10, %c0_11] : memref<4x1xf32, #tpu.memory_space<vmem>>, vector<4x1xf32>
    %31 = arith.addf %30, %24 : vector<4x1xf32>
    %c0_12 = arith.constant 0 : index
    %c0_13 = arith.constant 0 : index
    %32 = vector.load %arg5[%c0_12, %c0_13] : memref<4x1xf32, #tpu.memory_space<vmem>>, vector<4x1xf32>
    tpu.vector_store %arg5[%c0_12, %c0_13], %31 {strides = array<i32>} : memref<4x1xf32, #tpu.memory_space<vmem>>, vector<4x1xf32>,
    %c0_14 = arith.constant 0 : index
    %c0_15 = arith.constant 0 : index
    %33 = vector.load %arg6[%c0_14, %c0_15] : memref<4x1xf32, #tpu.memory_space<vmem>>, vector<4x1xf32>
    %34 = arith.addf %33, %29 : vector<4x1xf32>
    %c0_16 = arith.constant 0 : index
    %c0_17 = arith.constant 0 : index
    %35 = vector.load %arg6[%c0_16, %c0_17] : memref<4x1xf32, #tpu.memory_space<vmem>>, vector<4x1xf32>
    tpu.vector_store %arg6[%c0_16, %c0_17], %34 {strides = array<i32>} : memref<4x1xf32, #tpu.memory_space<vmem>>, vector<4x1xf32>,
    %c0_i32_18 = arith.constant 0 : i32
    %36 = arith.cmpi eq, %arg1, %c0_i32_18 : i32
    %37 = arith.extui %36 : i1 to i32
    %c0_i32_19 = arith.constant 0 : i32
    %38 = arith.cmpi ne, %37, %c0_i32_19 : i32
    scf.if %38 {
      %c0_20 = arith.constant 0 : index
      %c0_21 = arith.constant 0 : index
      %39 = vector.load %arg5[%c0_20, %c0_21] : memref<4x1xf32, #tpu.memory_space<vmem>>, vector<4x1xf32>
      %c0_22 = arith.constant 0 : index
      %c0_23 = arith.constant 0 : index
      %40 = vector.load %arg6[%c0_22, %c0_23] : memref<4x1xf32, #tpu.memory_space<vmem>>, vector<4x1xf32>
      %41 = tpu.concatenate %39, %40 in 1 : vector<4x1xf32>, vector<4x1xf32> -> vector<4x2xf32>
      %42 = vector.shape_cast %41 : vector<4x2xf32> to vector<1x4x2xf32>
      %c0_24 = arith.constant 0 : index
      %c0_25 = arith.constant 0 : index
      %c0_26 = arith.constant 0 : index
      %43 = vector.load %arg4[%c0_24, %c0_25, %c0_26] : memref<1x4x2xf32, #tpu.memory_space<vmem>>, vector<1x4x2xf32>
      tpu.vector_store %arg4[%c0_24, %c0_25, %c0_26], %42 {strides = array<i32>} : memref<1x4x2xf32, #tpu.memory_space<vmem>>, vector<1x4x2xf32>,
    } else {
    }
    return
  }
  func.func @transform_0(%arg0: i32, %arg1: i32) -> (i32, i32, i32) {
    %c0_i32 = arith.constant 0 : i32
    %c0_i32_0 = arith.constant 0 : i32
    return %arg0, %c0_i32, %arg1 : i32, i32, i32
  }
  func.func @transform_1(%arg0: i32, %arg1: i32) -> (i32, i32, i32) {
    %c0_i32 = arith.constant 0 : i32
    %c0_i32_0 = arith.constant 0 : i32
    return %arg0, %c0_i32, %arg1 : i32, i32, i32
  }
  func.func @transform_2(%arg0: i32, %arg1: i32) -> (i32, i32, i32) {
    %c0_i32 = arith.constant 0 : i32
    %c0_i32_0 = arith.constant 0 : i32
    %c0_i32_1 = arith.constant 0 : i32
    return %arg0, %c0_i32, %c0_i32_0 : i32, i32, i32
  }
}

</mosaic_0001>

<bundles_post_ra>
// kernel: tpu_custom_call.1
= control target key start
LH: loop header
LB: loop body
LE: loop exit
PB: predicated region body
PF: predicated region fallthrough
CT: control target
= control target key end

     0   :  { %7 = vsyncpa [#allocation5], 0  ;;  %s808_s0 = inlined_call_operand.hbm [shape: f32[2,4,256], index: 0, kind: input, shape index: {}]   ;;  %s809_s1 = inlined_call_operand.hbm [shape: s32[2,1,256], index: 1, kind: input, shape index: {}]   ;;  %s810_s2 = inlined_call_operand.vmem [shape: f32[2,4,2], index: 2, kind: output, shape index: {}]  }
   0x1   :  { %9 = vsyncpa [#allocation5 + $0x1], 0 }
   0x2   :  { %10 = vsyncpa [#allocation7], 0 }
   0x3   :  { %12 = vsyncpa [#allocation7 + $0x1], 0  ;;  %s663_s9 = smov 0   ;;  %s665_s10 = smov 0  }
   0x4   :  { %s667_s11 = smov 0   ;;  %s669_s12 = smov 0  }
   0x5   :  { %s671_s13 = smov 0   ;;  %s673_s14 = smov 0  }
   0x6 LB: > { %s443_s15 = sadd.s32 4294967295, %s642_s14   ;;  %s30_s16 = sadd.s32 1, %s638_s13  ;;  %s642_s14 = sphi %s673_s14, %s18_s14   ;;  %s638_s13 = sphi %s671_s13, %s819_s13   ;;  %s634_s12 = sphi %s669_s12, %s818_s12   ;;  %s630_s11 = sphi %s667_s11, %s817_s11   ;;  %s626_s10 = sphi %s665_s10, %s816_s10   ;;  %s622_s9 = sphi %s663_s9, %s815_s9  }
   0x7   : > { %p32_p0 = scmp.ge.s32.totalorder %s30_s16, 2  ;;  %s39_s17 = sadd.s32 1, %s630_s11 }
   0x8   : > { %p46_p1 = scmp.ne.s32.totalorder %s630_s11, %s626_s10  ;;  %p47_p2 = scmp.eq.s32.totalorder %s642_s14, 0 }
   0x9   : > { %s821_s16 = smov (%p32_p0, %s30_s16), 0  ;;  %p52_p4 = scmp.ne.s32.totalorder %s626_s10, %s622_s9 }
   0xa   : > { %p699_p3 = por %p47_p2, %p46_p1  ;;  %s34_s19 = ssub.s32 %s638_s13, %s821_s16 }
   0xb   : > { %p53_p5 = scmp.eq.s32.totalorder %s443_s15, 0  ;;  %p37_p6 = scmp.eq.s32.totalorder %s34_s19, 0 }
   0xc   : > { %p474_p8 = scmp.lt.s32.totalorder %s642_s14, 2  ;;  %s715_s22 = sand.u32 1, %s630_s11  }
   0xd   : > { %p706_p7 = por %p53_p5, %p52_p4  ;;  %s461_s23 = sshll.u32 %s638_s13, 7 }
   0xe   : > { %s712_s21 = scalar_select %p37_p6, %s630_s11, %s39_s17  }
   0xf   : > { %s447_s24 = sshll.u32 %s715_s22, 3  ;;  %s142_s27 = scalar_lea.hbm %s808_s0, %s461_s23 }
  0x10   : > { %s134_s28 = scalar_lea.vmem [#allocation4], %s447_s24  ;;  %p724_p9 = pnand %p474_p8, %p699_p3 }
  0x11   : > { %s144_s29 = sshll.u32 %s134_s28, 4  ;;  %p453_p10 = scmp.ge.s32.totalorder %s642_s14, 1  ;;  %s145_s29 = int_to_ptr.vmem [resolvable:$true] %s144_s29 }
  0x12   : > { %p170_p11 = scmp.lt.s32.totalorder %s642_s14, 3  ;;  %s131_s3 = scalar_lea.sflag [#allocation5], %s715_s22 }
  0x13   : > { %p534_p12 = pneg %p724_p9  ;;  %s545_s4 = scalar_lea.vmem %s145_s29, 128 }
  0x14   : > { %p546_p13 = scmp.ne.s32.totalorder %s145_s29, %s545_s4  ;;  %s644_s5 = smov [#allocation4]  }
  0x15   : > { %s550_s6 = sshll.u32 %s644_s5, 4  ;;  %s551_s6 = int_to_ptr.vmem [resolvable:$false] %s550_s6 }
  0x16   : > { %p548_p0 = pnand %p546_p13, %p534_p12  ;;  %s552_s7 = scalar_lea.vmem %s551_s6, 256 }
  0x17   : > { %p553_p2 = scmp.lt.s32.totalorder %s145_s29, %s551_s6  ;;  %p554_p3 = scmp.lt.s32.totalorder %s552_s7, %s545_s4 }
  0x18   : > { %p549_p1 = pneg %p548_p0 }
  0x19   : > { %p555_p4 = por %p554_p3, %p553_p2 }
  0x1b   : > { %p556_p5 = pnand %p555_p4, %p549_p1 }
  0x1d   : > { %559 = shalt.err (!%p556_p5)
}
  0x1e   : > { %470 = dma.hbm_to_vmem [thread:$0]  (!%p724_p9), %s142_s27, 128, %s145_s29, %s131_s3  }
  0x1f   : > { %p742_p6 = pnand %p453_p10, %p170_p11  ;;  %s450_s9 = sshll.u32 %s715_s22, 1 }
  0x20   : > { %s462_s15 = sshll.u32 %s638_s13, 5  ;;  %s155_s23 = scalar_lea.vmem [#allocation6], %s450_s9 }
  0x21   : > { %s163_s19 = scalar_lea.hbm %s809_s1, %s462_s15  ;;  %s165_s24 = sshll.u32 %s155_s23, 4  ;;  %s166_s24 = int_to_ptr.vmem [resolvable:$true] %s165_s24 }
  0x22   : > { %s152_s25 = scalar_lea.sflag [#allocation7], %s715_s22  ;;  %s573_s26 = scalar_lea.vmem %s166_s24, 32 }
  0x23   : > { %p574_p8 = scmp.ne.s32.totalorder %s166_s24, %s573_s26  ;;  %s645_s27 = smov [#allocation6]  }
  0x24   : > { %s578_s28 = sshll.u32 %s645_s27, 4  ;;  %s579_s28 = int_to_ptr.vmem [resolvable:$false] %s578_s28 }
  0x25   : > { %p576_p13 = pnand %p574_p8, %p534_p12  ;;  %s580_s29 = scalar_lea.vmem %s579_s28, 64 }
  0x26   : > { %p581_p10 = scmp.lt.s32.totalorder %s166_s24, %s579_s28  ;;  %p582_p11 = scmp.lt.s32.totalorder %s580_s29, %s573_s26 }
  0x27   : > { %p577_p0 = pneg %p576_p13 }
  0x28   : > { %p583_p1 = por %p582_p11, %p581_p10 }
  0x2a   : > { %p584_p2 = pnand %p583_p1, %p577_p0 }
  0x2c   : > { %587 = shalt.err (!%p584_p2)
}
  0x2d   : > { %473 = dma.hbm_to_vmem [thread:$0]  (!%p724_p9), %s163_s19, 32, %s166_s24, %s152_s25  }
  0x2e   : > { %174 = sbr.rel (%p742_p6) target bundleno = 400 (0x190), region = 28  ;;  %s176_s22 = sand.u32 (!%p742_p6), 1, %s626_s10  }
  0x2f   : > { %s454_s3 = sshll.u32 (!%p742_p6), %s176_s22, 3  ;;  %s177_s4 = scalar_lea.sflag (!%p742_p6), [#allocation5], %s176_s22 }
  0x30   : > { %s180_s5 = scalar_lea.vmem (!%p742_p6), [#allocation4], %s454_s3 }
  0x33   : > { %613 = dma.done.wait (%p706_p7), %s177_s4, 128  }
  0x34   : > { %615 = vsyncadd (%p706_p7), %s177_s4, 4294967168  ;;  %s455_s6 = sshll.u32 %s176_s22, 1  ;;  %s186_s7 = scalar_lea.sflag [#allocation7], %s176_s22 }
  0x35   : > { %s764_s9 = scalar_lea.vmem [#allocation6], %s455_s6 }
  0x36   : > { %617 = dma.done.wait (%p706_p7), %s186_s7, 32  }
  0x37   : > { %619 = vsyncadd (%p706_p7), %s186_s7, 4294967264  ;;  %vm224_vm0 = vcmask 3072   ;;  %v646_v0 = vmov 0.0   ;;  %vm232_vm1 = vcmask 1043456   ;;  %v227_v1 = vld [vmem:[%s180_s5] sm:$0xff]  ;;  %v278_v33 = vlaneseq  ;;  %s647_s20 = smov 1  }
  0x38   : > { %225 = vst.msk [vmem:[#allocation2] sm:$0xf] %vm224_vm0, %v646_v0  ;;  %226 = vst.msk [vmem:[#allocation3] sm:$0xf] %vm224_vm0, %v646_v0  ;;  %v230_v2 = vcombine.high %v227_v1, %v227_v1  ;;  %v233_v3 = vsel %vm232_vm1, %v227_v1, -inf  ;;  %p216_p7 = scmp.lt.s32.totalorder %s634_s12, 1 }
  0x39   : > { %v234_v4 = vrot.slane %v233_v3, 4  ;;  %v279_v37 = vshrl.u32 %v278_v33, 7  ;;  %v228_v40 = vld [vmem:[%s764_s9] sm:$0x3]  ;;  %vm337_vm4 = vcmask 7168   ;;  %vm339_vm5 = vcmask 11264  }
  0x3a   : > { %v240_v5 = vsel %vm232_vm1, %v230_v2, -inf  ;;  %s823_s12 = smov (!%p216_p7, %s634_s12), 1 }
  0x3b   : > { %v235_v6 = vmax.f32 %v233_v3, %v234_v4  ;;  %v241_v7 = vrot.slane %v240_v5, 4  ;;  %v282_v38 = vsub.s32 0, %v279_v37  ;;  %v286_v39 = vsub.s32 1, %v279_v37  ;;  %s456_s30 = sshll.u32 %s823_s12, 2 }
  0x3c   : > { %s219_s17 = scalar_lea.vmem %s810_s2, %s456_s30 }
  0x3d   : > { %v236_v8 = vrot.slane %v235_v6, 2  ;;  %v242_v9 = vmax.f32 %v240_v5, %v241_v7  ;;  %v283_v41 = vrot.slane %v228_v40, %v282_v38  ;;  %v287_v42 = vrot.slane %v228_v40, %v286_v39 }
  0x3f   : > { %v237_v10 = vmax.f32 %v235_v6, %v236_v8  ;;  %v243_v11 = vrot.slane %v242_v9, 2  ;;  %vm288_vm2 = vcmp.eq.s32.totalorder %v283_v41, %v279_v37  ;;  %vm289_vm3 = vcmp.eq.s32.totalorder %v287_v42, %v279_v37  ;;  %v321_v63 = vld [vmem:[#allocation2] sm:$0xf]  ;;  %v325_v3 = vld [vmem:[#allocation3] sm:$0xf] }
  0x40   : > { %v457_v45 = vsel %vm288_vm2, 1.0, %v646_v0  ;;  %v458_v46 = vsel %vm289_vm3, 1.0, %v646_v0 }
  0x41   : > { %v238_v12 = vrot.slane %v237_v10, 1  ;;  %v244_v13 = vmax.f32 %v242_v9, %v243_v11  ;;  %v296_v48 = vcombine.low %v457_v45, %v458_v46  ;;  %v315_v53 = vsel %vm232_vm1, %v457_v45, 0.0 }
  0x42   : > { %v316_v55 = vsel %vm232_vm1, %v458_v46, 0.0 }
  0x43   : > { %v239_v14 = vmax.f32 %v237_v10, %v238_v12  ;;  %v245_v15 = vrot.slane %v244_v13, 1  ;;  %v317_v60 = vadd.f32 %v316_v55, %v315_v53 }
  0x45   : > { %v246_v16 = vmax.f32 %v244_v13, %v245_v15 }
  0x47   : > { %v249_v17 = vcombine.low %v239_v14, %v246_v16 }
  0x49   : > { %v251_v18 = vsub.f32 %v227_v1, %v249_v17 }
  0x4b   : > { %v252_v19 = vmul.f32 1.442695, %v251_v18 }
  0x4d   : > { %526 = vpow2.f32 %v252_v19 }
  0x5a   : > { %v527_v20 = vpop.eup %526 }
  0x5b   : > { %v255_v21 = vcombine.high %v527_v20, %v527_v20  ;;  %v257_v22 = vsel %vm232_vm1, %v527_v20, 0.0 }
  0x5c   : > { %v258_v23 = vrot.slane %v257_v22, 4 }
  0x5d   : > { %v264_v24 = vsel %vm232_vm1, %v255_v21, 0.0 }
  0x5e   : > { %v259_v25 = vadd.f32 %v258_v23, %v257_v22  ;;  %v265_v26 = vrot.slane %v264_v24, 4 }
  0x60   : > { %v260_v27 = vrot.slane %v259_v25, 2  ;;  %v266_v28 = vadd.f32 %v265_v26, %v264_v24 }
  0x62   : > { %v261_v29 = vadd.f32 %v260_v27, %v259_v25  ;;  %v267_v30 = vrot.slane %v266_v28, 2 }
  0x64   : > { %v262_v31 = vrot.slane %v261_v29, 1  ;;  %v268_v32 = vadd.f32 %v267_v30, %v266_v28 }
  0x66   : > { %v263_v34 = vadd.f32 %v262_v31, %v261_v29  ;;  %v269_v35 = vrot.slane %v268_v32, 1 }
  0x68   : > { %v270_v36 = vadd.f32 %v269_v35, %v268_v32  ;;  %528 = vrcp.f32 %v263_v34 }
  0x6a   : > { %530 = vrcp.f32 %v270_v36 }
  0x75   : > { %v529_v43 = vpop.eup %528 }
  0x77   : > { %v531_v44 = vpop.eup %530 }
  0x78   : > { %v275_v47 = vcombine.low %v529_v43, %v531_v44 }
  0x7a   : > { %v277_v49 = vmul.f32 %v527_v20, %v275_v47 }
  0x7c   : > { %v308_v50 = vcombine.high %v277_v49, %v277_v49  ;;  %v310_v51 = vsel %vm232_vm1, %v277_v49, 0.0  ;;  %v298_v52 = vmul.f32 %v296_v48, %v277_v49 }
  0x7e   : > { %v311_v54 = vsel %vm232_vm1, %v308_v50, 0.0  ;;  %v300_v56 = vcombine.high %v298_v52, %v298_v52  ;;  %v302_v57 = vsel %vm232_vm1, %v298_v52, 0.0 }
  0x7f   : > { %v312_v58 = vadd.f32 %v311_v54, %v310_v51 }
  0x80   : > { %v303_v59 = vsel %vm232_vm1, %v300_v56, 0.0 }
  0x81   : > { %313 = vadd.xlane.f32.xlu0 %v312_v58  ;;  %v304_v61 = vadd.f32 %v303_v59, %v302_v57 }
  0x83   : > { %305 = vadd.xlane.f32.xlu1 %v304_v61 }
  0x85   : > { %318 = vadd.xlane.f32.xlu0 %v317_v60 }
 0x10a   : > { %v314_v62 = vpop.xlane.xlu0 %313 }
 0x10c   : > { %v306_v0 = vpop.xlane.xlu1 %305 }
 0x10d   : > { %v322_v1 = vadd.f32 %v321_v63, %v306_v0 }
 0x10e   : > { %v319_v2 = vpop.xlane.xlu0 %318 }
 0x10f   : > { %v320_v4 = vadd.f32 %v319_v2, %v314_v62  ;;  %324 = vst.msk [vmem:[#allocation2] sm:$0xf] %vm224_vm0, %v322_v1 }
 0x111   : > { %v326_v5 = vadd.f32 %v325_v3, %v320_v4 }
 0x113   : > { %327 = vst.msk [vmem:[#allocation3] sm:$0xf] %vm224_vm0, %v326_v5 }
 0x116   : > { %v331_v7 = vld [vmem:[#allocation2] sm:$0xf] }
 0x11a   : > { %v332_v6 = vld [vmem:[#allocation3] sm:$0xf] }
 0x11b   : > { %334 = vrot.lane.b32.xlu1 %v332_v6, %s647_s20 }
 0x18d   : > { %v335_v8 = vpop.permute.xlu1 %334 }
 0x18e   : > { %v338_v9 = vsel %vm337_vm4, %v331_v7, %v335_v8 }
 0x18f   : > { %340 = vst.msk [vmem:[%s219_s17] sm:$0xf] %vm339_vm5, %v338_v9 }
 0x190 PF: > { %s18_s14 = sadd.s32 1, %s642_s14   ;;  %s815_s9 = smov %s626_s10 }
 0x191   : > { %p15_p9 = scmp.ge.s32.totalorder %s18_s14, 4   ;;  %s816_s10 = smov %s630_s11 }
 0x192   : > { %s817_s11 = smov %s712_s21  ;;  %s818_s12 = smov %s638_s13 }
 0x193   : > { %s819_s13 = smov %s821_s16  ;;  %17 = sbr.rel (!%p15_p9) target bundleno = 6 (0x6), region = 89 }
 0x198   :  { %360 = vsyncpa [#allocation5], 1 }
 0x199   :  { %362 = vsyncpa [#allocation5 + $0x1], 1 }
 0x19a   :  { %363 = vsyncpa [#allocation7], 1 }
 0x19b   :  { %365 = vsyncpa [#allocation7 + $0x1], 1 }

</bundles_post_ra>
